<compile_context>
chip_gen: v7x
topology: tpu7x:2x2x1
jax: 0.10.0
libtpu: 0.0.40
codegen_flags: <defaults>
</compile_context>

<pallas_src>
import jax
import jax.numpy as jnp
from jax import lax
from jax.experimental import pallas as pl
from jax.experimental.pallas import tpu as pltpu

NUM_QUBITS = 2
NUM_LAYERS = 3
DIM = 2 ** NUM_QUBITS                       # 4 complex amplitudes
PACK = 2 * DIM                              # 8 reals: [re(psi) ; im(psi)]
TILE_C = 128                                # lane width of the carried state
NUM_GATES = NUM_LAYERS * NUM_QUBITS * 2     # 3 layers x (2 Rot + 2 CNOT) = 12


# ----------------------------- Pallas kernel -------------------------------
def circuit_kernel(gates_ref, out_ref):
    # gates_ref: (NUM_GATES, PACK, PACK) f32 -- full gate stack in VMEM.
    # State carried as an (PACK, TILE_C) f32 register value; column 0 (lane 0)
    # holds the packed amplitudes [re|im] along sublanes, all other lanes 0.
    row = lax.broadcasted_iota(jnp.int32, (PACK, TILE_C), 0)
    col = lax.broadcasted_iota(jnp.int32, (PACK, TILE_C), 1)
    state = jnp.where((row == 0) & (col == 0), 1.0, 0.0).astype(jnp.float32)

    # Fully unrolled serial gate chain: 12 tiny (8,8)x(8,128) MXU matmuls.
    for g in range(NUM_GATES):
        state = jnp.dot(gates_ref[g], state,
                        preferred_element_type=jnp.float32)

    out_ref[...] = state


def run_circuit_pallas(gate_stack):
    # Single kernel invocation: the entire (tiny) gate stack is one block.
    return pl.pallas_call(
        circuit_kernel,
        out_shape=jax.ShapeDtypeStruct((PACK, TILE_C), jnp.float32),
        grid=(1,),
        in_specs=[pl.BlockSpec((NUM_GATES, PACK, PACK), lambda i: (0, 0, 0))],
        out_specs=pl.BlockSpec((PACK, TILE_C), lambda i: (0, 0)),
        compiler_params=pltpu.CompilerParams(
            dimension_semantics=("arbitrary",)),
    )(gate_stack)


# --------------------------- gate construction (glue) ----------------------
def rot_matrix(phi, theta, omega):
    """PennyLane qml.Rot(phi, theta, omega) = RZ(omega) RY(theta) RZ(phi)."""
    c = jnp.cos(theta / 2.0).astype(jnp.complex64)
    s = jnp.sin(theta / 2.0).astype(jnp.complex64)
    em = jnp.exp(-0.5j * (phi + omega))
    ep = jnp.exp(0.5j * (phi + omega))
    emd = jnp.exp(-0.5j * (phi - omega))
    epd = jnp.exp(0.5j * (phi - omega))
    row0 = jnp.stack([em * c, -epd * s])
    row1 = jnp.stack([emd * s, ep * c])
    return jnp.stack([row0, row1]).astype(jnp.complex64)


def single_qubit_on(U, wire):
    """Embed 2x2 U on `wire` of a 2-qubit register (wire 0 = MSB)."""
    I = jnp.eye(2, dtype=jnp.complex64)
    return jnp.kron(U, I) if wire == 0 else jnp.kron(I, U)


def cnot_matrix(control, target):
    # basis order |00>,|01>,|10>,|11>, wire 0 is the most significant bit
    if (control, target) == (0, 1):
        m = [[1, 0, 0, 0], [0, 1, 0, 0], [0, 0, 0, 1], [0, 0, 1, 0]]
    else:  # (1, 0)
        m = [[1, 0, 0, 0], [0, 0, 0, 1], [0, 0, 1, 0], [0, 1, 0, 0]]
    return jnp.array(m, dtype=jnp.complex64)


def block_complex(G):
    """Real (8,8) M so that [yr; yi] = M @ [xr; xi]  <=>  y = G x."""
    Gr = jnp.real(G).astype(jnp.float32)
    Gi = jnp.imag(G).astype(jnp.float32)
    top = jnp.concatenate([Gr, -Gi], axis=1)
    bot = jnp.concatenate([Gi, Gr], axis=1)
    return jnp.concatenate([top, bot], axis=0)


def build_gate_stack(params):
    """params: (num_layers * num_qubits * 3,) rotation angles."""
    p = params.reshape(NUM_LAYERS, NUM_QUBITS, 3).astype(jnp.float32)
    gates = []
    for layer in range(NUM_LAYERS):
        for q in range(NUM_QUBITS):
            U = rot_matrix(p[layer, q, 0], p[layer, q, 1], p[layer, q, 2])
            gates.append(single_qubit_on(U, q))
        for q in range(NUM_QUBITS):
            gates.append(cnot_matrix(q, (q + 1) % NUM_QUBITS))
    # compact (NUM_GATES, 8, 8) f32 stack, in application order
    stack = jnp.stack([block_complex(G) for G in gates])
    return stack, gates


# ------------------------------- module forward -----------------------------
def quantum_generator_forward(params):
    gate_stack, gates_complex = build_gate_stack(params)
    out = run_circuit_pallas(gate_stack)

    re = out[:DIM, 0]
    im = out[DIM:PACK, 0]
    state = re.astype(jnp.complex64) + 1j * im.astype(jnp.complex64)
    state = state / jnp.linalg.norm(state)          # forward(): state / norm
    return state, gates_complex


def reference_state(gates_complex):
    psi = jnp.zeros((DIM,), jnp.complex64).at[0].set(1.0)
    for G in gates_complex:
        psi = G @ psi
    return psi / jnp.linalg.norm(psi)


if __name__ == "__main__":
    key = jax.random.PRNGKey(0)
    # matches nn.Parameter(torch.rand(num_layers * num_qubits * 3) * 2*pi)
    params = jax.random.uniform(
        key, (NUM_LAYERS * NUM_QUBITS * 3,), dtype=jnp.float32) * 2.0 * jnp.pi

    state, gates_complex = quantum_generator_forward(params)
    state = jax.block_until_ready(state)

    ref = jax.block_until_ready(reference_state(gates_complex))

    assert state.shape == (DIM,) and state.dtype == jnp.complex64
    assert jnp.allclose(jnp.abs(jnp.vdot(state, state)), 1.0, atol=1e-5)
    assert jnp.allclose(state, ref, atol=1e-5), (state, ref)
    print("KERNEL_OK")
</pallas_src>

<mosaic_0001>
module attributes {stable_mosaic.version = 11 : i64} {
  func.func @circuit_kernel(%arg0: i32, %arg1: memref<12x8x8xf32, #tpu.memory_space<vmem>>, %arg2: memref<8x128xf32, #tpu.memory_space<vmem>>) attributes {dimension_semantics = [#tpu.dimension_semantics<arbitrary>], iteration_bounds = array<i64: 1>, scalar_prefetch = 0 : i64, scratch_operands = 0 : i64, tpu.core_type = #tpu.core_type<tc>, window_params = [{pipeline_mode = #tpu.pipeline_mode<synchronous>, transform_indices = @transform_0, window_bounds = array<i64: 12, 8, 8>}, {pipeline_mode = #tpu.pipeline_mode<synchronous>, transform_indices = @transform_1, window_bounds = array<i64: 8, 128>}]} {
    %0 = tpu.iota {dimensions = array<i32: 0>} : vector<8x128xi32>
    %1 = tpu.iota {dimensions = array<i32: 1>} : vector<8x128xi32>
    %c0_i32 = arith.constant 0 : i32
    %2 = vector.broadcast %c0_i32 : i32 to vector<8x128xi32>
    %3 = arith.cmpi eq, %0, %2 : vector<8x128xi32>
    %c0_i32_0 = arith.constant 0 : i32
    %4 = vector.broadcast %c0_i32_0 : i32 to vector<8x128xi32>
    %5 = arith.cmpi eq, %1, %4 : vector<8x128xi32>
    %6 = arith.andi %3, %5 : vector<8x128xi1>
    %cst = arith.constant 1.000000e+00 : f32
    %cst_1 = arith.constant 0.000000e+00 : f32
    %7 = vector.broadcast %cst : f32 to vector<8x128xf32>
    %8 = vector.broadcast %cst_1 : f32 to vector<8x128xf32>
    %9 = arith.select %6, %7, %8 : vector<8x128xi1>, vector<8x128xf32>
    %c0 = arith.constant 0 : index
    %c0_2 = arith.constant 0 : index
    %c0_3 = arith.constant 0 : index
    %10 = vector.load %arg1[%c0, %c0_2, %c0_3] : memref<12x8x8xf32, #tpu.memory_space<vmem>>, vector<1x8x8xf32>
    %11 = vector.shape_cast %10 : vector<1x8x8xf32> to vector<8x8xf32>
    %cst_4 = arith.constant dense<0.000000e+00> : vector<8x128xf32>
    %12 = tpu.matmul %11, %9, %cst_4 {dimension_numbers = #tpu.dot_dimension_numbers<[1], [0], [0], [1], [0, 0, 1, 1], [], []>} : vector<8x8xf32>, vector<8x128xf32>, vector<8x128xf32> -> vector<8x128xf32>
    %c1 = arith.constant 1 : index
    %c0_5 = arith.constant 0 : index
    %c0_6 = arith.constant 0 : index
    %13 = vector.load %arg1[%c1, %c0_5, %c0_6] : memref<12x8x8xf32, #tpu.memory_space<vmem>>, vector<1x8x8xf32>
    %14 = vector.shape_cast %13 : vector<1x8x8xf32> to vector<8x8xf32>
    %cst_7 = arith.constant dense<0.000000e+00> : vector<8x128xf32>
    %15 = tpu.matmul %14, %12, %cst_7 {dimension_numbers = #tpu.dot_dimension_numbers<[1], [0], [0], [1], [0, 0, 1, 1], [], []>} : vector<8x8xf32>, vector<8x128xf32>, vector<8x128xf32> -> vector<8x128xf32>
    %c2 = arith.constant 2 : index
    %c0_8 = arith.constant 0 : index
    %c0_9 = arith.constant 0 : index
    %16 = vector.load %arg1[%c2, %c0_8, %c0_9] : memref<12x8x8xf32, #tpu.memory_space<vmem>>, vector<1x8x8xf32>
    %17 = vector.shape_cast %16 : vector<1x8x8xf32> to vector<8x8xf32>
    %cst_10 = arith.constant dense<0.000000e+00> : vector<8x128xf32>
    %18 = tpu.matmul %17, %15, %cst_10 {dimension_numbers = #tpu.dot_dimension_numbers<[1], [0], [0], [1], [0, 0, 1, 1], [], []>} : vector<8x8xf32>, vector<8x128xf32>, vector<8x128xf32> -> vector<8x128xf32>
    %c3 = arith.constant 3 : index
    %c0_11 = arith.constant 0 : index
    %c0_12 = arith.constant 0 : index
    %19 = vector.load %arg1[%c3, %c0_11, %c0_12] : memref<12x8x8xf32, #tpu.memory_space<vmem>>, vector<1x8x8xf32>
    %20 = vector.shape_cast %19 : vector<1x8x8xf32> to vector<8x8xf32>
    %cst_13 = arith.constant dense<0.000000e+00> : vector<8x128xf32>
    %21 = tpu.matmul %20, %18, %cst_13 {dimension_numbers = #tpu.dot_dimension_numbers<[1], [0], [0], [1], [0, 0, 1, 1], [], []>} : vector<8x8xf32>, vector<8x128xf32>, vector<8x128xf32> -> vector<8x128xf32>
    %c4 = arith.constant 4 : index
    %c0_14 = arith.constant 0 : index
    %c0_15 = arith.constant 0 : index
    %22 = vector.load %arg1[%c4, %c0_14, %c0_15] : memref<12x8x8xf32, #tpu.memory_space<vmem>>, vector<1x8x8xf32>
    %23 = vector.shape_cast %22 : vector<1x8x8xf32> to vector<8x8xf32>
    %cst_16 = arith.constant dense<0.000000e+00> : vector<8x128xf32>
    %24 = tpu.matmul %23, %21, %cst_16 {dimension_numbers = #tpu.dot_dimension_numbers<[1], [0], [0], [1], [0, 0, 1, 1], [], []>} : vector<8x8xf32>, vector<8x128xf32>, vector<8x128xf32> -> vector<8x128xf32>
    %c5 = arith.constant 5 : index
    %c0_17 = arith.constant 0 : index
    %c0_18 = arith.constant 0 : index
    %25 = vector.load %arg1[%c5, %c0_17, %c0_18] : memref<12x8x8xf32, #tpu.memory_space<vmem>>, vector<1x8x8xf32>
    %26 = vector.shape_cast %25 : vector<1x8x8xf32> to vector<8x8xf32>
    %cst_19 = arith.constant dense<0.000000e+00> : vector<8x128xf32>
    %27 = tpu.matmul %26, %24, %cst_19 {dimension_numbers = #tpu.dot_dimension_numbers<[1], [0], [0], [1], [0, 0, 1, 1], [], []>} : vector<8x8xf32>, vector<8x128xf32>, vector<8x128xf32> -> vector<8x128xf32>
    %c6 = arith.constant 6 : index
    %c0_20 = arith.constant 0 : index
    %c0_21 = arith.constant 0 : index
    %28 = vector.load %arg1[%c6, %c0_20, %c0_21] : memref<12x8x8xf32, #tpu.memory_space<vmem>>, vector<1x8x8xf32>
    %29 = vector.shape_cast %28 : vector<1x8x8xf32> to vector<8x8xf32>
    %cst_22 = arith.constant dense<0.000000e+00> : vector<8x128xf32>
    %30 = tpu.matmul %29, %27, %cst_22 {dimension_numbers = #tpu.dot_dimension_numbers<[1], [0], [0], [1], [0, 0, 1, 1], [], []>} : vector<8x8xf32>, vector<8x128xf32>, vector<8x128xf32> -> vector<8x128xf32>
    %c7 = arith.constant 7 : index
    %c0_23 = arith.constant 0 : index
    %c0_24 = arith.constant 0 : index
    %31 = vector.load %arg1[%c7, %c0_23, %c0_24] : memref<12x8x8xf32, #tpu.memory_space<vmem>>, vector<1x8x8xf32>
    %32 = vector.shape_cast %31 : vector<1x8x8xf32> to vector<8x8xf32>
    %cst_25 = arith.constant dense<0.000000e+00> : vector<8x128xf32>
    %33 = tpu.matmul %32, %30, %cst_25 {dimension_numbers = #tpu.dot_dimension_numbers<[1], [0], [0], [1], [0, 0, 1, 1], [], []>} : vector<8x8xf32>, vector<8x128xf32>, vector<8x128xf32> -> vector<8x128xf32>
    %c8 = arith.constant 8 : index
    %c0_26 = arith.constant 0 : index
    %c0_27 = arith.constant 0 : index
    %34 = vector.load %arg1[%c8, %c0_26, %c0_27] : memref<12x8x8xf32, #tpu.memory_space<vmem>>, vector<1x8x8xf32>
    %35 = vector.shape_cast %34 : vector<1x8x8xf32> to vector<8x8xf32>
    %cst_28 = arith.constant dense<0.000000e+00> : vector<8x128xf32>
    %36 = tpu.matmul %35, %33, %cst_28 {dimension_numbers = #tpu.dot_dimension_numbers<[1], [0], [0], [1], [0, 0, 1, 1], [], []>} : vector<8x8xf32>, vector<8x128xf32>, vector<8x128xf32> -> vector<8x128xf32>
    %c9 = arith.constant 9 : index
    %c0_29 = arith.constant 0 : index
    %c0_30 = arith.constant 0 : index
    %37 = vector.load %arg1[%c9, %c0_29, %c0_30] : memref<12x8x8xf32, #tpu.memory_space<vmem>>, vector<1x8x8xf32>
    %38 = vector.shape_cast %37 : vector<1x8x8xf32> to vector<8x8xf32>
    %cst_31 = arith.constant dense<0.000000e+00> : vector<8x128xf32>
    %39 = tpu.matmul %38, %36, %cst_31 {dimension_numbers = #tpu.dot_dimension_numbers<[1], [0], [0], [1], [0, 0, 1, 1], [], []>} : vector<8x8xf32>, vector<8x128xf32>, vector<8x128xf32> -> vector<8x128xf32>
    %c10 = arith.constant 10 : index
    %c0_32 = arith.constant 0 : index
    %c0_33 = arith.constant 0 : index
    %40 = vector.load %arg1[%c10, %c0_32, %c0_33] : memref<12x8x8xf32, #tpu.memory_space<vmem>>, vector<1x8x8xf32>
    %41 = vector.shape_cast %40 : vector<1x8x8xf32> to vector<8x8xf32>
    %cst_34 = arith.constant dense<0.000000e+00> : vector<8x128xf32>
    %42 = tpu.matmul %41, %39, %cst_34 {dimension_numbers = #tpu.dot_dimension_numbers<[1], [0], [0], [1], [0, 0, 1, 1], [], []>} : vector<8x8xf32>, vector<8x128xf32>, vector<8x128xf32> -> vector<8x128xf32>
    %c11 = arith.constant 11 : index
    %c0_35 = arith.constant 0 : index
    %c0_36 = arith.constant 0 : index
    %43 = vector.load %arg1[%c11, %c0_35, %c0_36] : memref<12x8x8xf32, #tpu.memory_space<vmem>>, vector<1x8x8xf32>
    %44 = vector.shape_cast %43 : vector<1x8x8xf32> to vector<8x8xf32>
    %cst_37 = arith.constant dense<0.000000e+00> : vector<8x128xf32>
    %45 = tpu.matmul %44, %42, %cst_37 {dimension_numbers = #tpu.dot_dimension_numbers<[1], [0], [0], [1], [0, 0, 1, 1], [], []>} : vector<8x8xf32>, vector<8x128xf32>, vector<8x128xf32> -> vector<8x128xf32>
    %c0_38 = arith.constant 0 : index
    %c0_39 = arith.constant 0 : index
    %46 = vector.load %arg2[%c0_38, %c0_39] : memref<8x128xf32, #tpu.memory_space<vmem>>, vector<8x128xf32>
    tpu.vector_store %arg2[%c0_38, %c0_39], %45 {strides = array<i32>} : memref<8x128xf32, #tpu.memory_space<vmem>>, vector<8x128xf32>,
    return
  }
  func.func @transform_0(%arg0: i32) -> (i32, i32, i32) {
    %c0_i32 = arith.constant 0 : i32
    %c0_i32_0 = arith.constant 0 : i32
    %c0_i32_1 = arith.constant 0 : i32
    %c0_i32_2 = arith.constant 0 : i32
    return %c0_i32, %c0_i32_0, %c0_i32_1 : i32, i32, i32
  }
  func.func @transform_1(%arg0: i32) -> (i32, i32) {
    %c0_i32 = arith.constant 0 : i32
    %c0_i32_0 = arith.constant 0 : i32
    %c0_i32_1 = arith.constant 0 : i32
    return %c0_i32, %c0_i32_0 : i32, i32
  }
}

</mosaic_0001>

<bundles_post_ra>
// kernel: tpu_custom_call.1
= control target key start
LH: loop header
LB: loop body
LE: loop exit
PB: predicated region body
PF: predicated region fallthrough
CT: control target
= control target key end

     0   :  { %v9_v0 = vlaneseq  ;;  %s1178_s0 = inlined_call_operand.vmem [shape: f32[12,8,8], index: 0, kind: input, shape index: {}]   ;;  %s1179_s1 = inlined_call_operand.hbm [shape: f32[8,128], index: 1, kind: output, shape index: {}]  }
   0x1   :  { %6 = vsyncpa [#allocation3], 0  ;;  %v1068_v1 = vmov 0.0   ;;  %vm1069_vm0 = vmmov 0   ;;  %v17_v4 = vld [vmem:[%s1178_s0] sm:$0xff]  ;;  %vm18_vm3 = vcmask 64512  }
   0x2   :  { %980 = vmatprep.subr.mxu0 %v1068_v1  ;;  %982 = vmatprep.mubr.msk.f32.mxu0 %vm1069_vm0, %v1068_v1  ;;  %v10_v2 = vshrl.u32 %v9_v0, 7  ;;  %v12_v3 = vand.u32 127, %v9_v0  ;;  %v1070_v5 = vmov 1.0   ;;  %v934_v6 = vld [vmem:[%s1178_s0 + $0x8] sm:$0xff]  ;;  %v936_v9 = vld [vmem:[%s1178_s0 + $0x10] sm:$0xff]  ;;  %v938_v12 = vld [vmem:[%s1178_s0 + $0x18] sm:$0xff] }
   0x3   :  { %985 = vmatprep.subr.mxu1 %v1068_v1  ;;  %987 = vmatprep.mubr.msk.f32.mxu1 %vm1069_vm0, %v1068_v1  ;;  %v940_v15 = vld [vmem:[%s1178_s0 + $0x20] sm:$0xff]  ;;  %v942_v18 = vld [vmem:[%s1178_s0 + $0x28] sm:$0xff]  ;;  %v944_v21 = vld [vmem:[%s1178_s0 + $0x30] sm:$0xff]  ;;  %s1071_s30 = smov [#allocation2]  }
   0x4   :  { %vm13_vm1 = vcmp.eq.s32.totalorder %v10_v2, 0  ;;  %vm14_vm2 = vcmp.eq.s32.totalorder %v12_v3, 0  ;;  %v946_v24 = vld [vmem:[%s1178_s0 + $0x38] sm:$0xff]  ;;  %v948_v27 = vld [vmem:[%s1178_s0 + $0x40] sm:$0xff]  ;;  %v950_v30 = vld [vmem:[%s1178_s0 + $0x48] sm:$0xff]  ;;  %s924_s2 = sshll.u32 %s1071_s30, 4  ;;  %s925_s2 = int_to_ptr.vmem [resolvable:$true] %s924_s2 }
   0x5   :  { %vm15_vm4 = vmand %vm13_vm1, %vm14_vm2  ;;  %v952_v33 = vld [vmem:[%s1178_s0 + $0x50] sm:$0xff]  ;;  %v954_v36 = vld [vmem:[%s1178_s0 + $0x58] sm:$0xff]  ;;  %s1044_s3 = scalar_lea.vmem %s925_s2, 128  ;;  %p1049_p1 = scmp.lt.s32.totalorder %s925_s2, %s925_s2 }
   0x6   :  { %981 = vmatpush3.msk.msra.mxu0 %vm15_vm4, %v1070_v5  ;;  %p1045_p0 = scmp.ne.s32.totalorder %s925_s2, %s1044_s3  ;;  %p1050_p2 = scmp.lt.s32.totalorder %s1044_s3, %s1044_s3 }
   0x7   :  { %983 = vmatmul.mubr.msk.f32.vlgmr.msra.gmra.mrb[0].mxu0 %vm18_vm3, %v17_v4  ;;  %990 = vmatprep.subr.mxu0 %v1068_v1 }
   0x8   :  { %992 = vmatprep.mubr.msk.f32.mxu0 %vm1069_vm0, %v1068_v1  ;;  %p1051_p3 = por %p1050_p2, %p1049_p1 }
   0xa   :  { %p1052_p4 = pnand %p1051_p3, %p1045_p0 }
  0xda   :  { %v88_v7 = vpop.f32.mrb[0].mxu0 }
  0xdb   :  { %v984_v8 = vpop.f32.mrb[1].mxu0  ;;  %986 = vmatpush3.msra.mxu1 %v88_v7 }
  0xdc   :  { %988 = vmatmul.mubr.msk.f32.vlgmr.msra.gmra.mrb[0].mxu1 %vm18_vm3, %v934_v6  ;;  %995 = vmatprep.subr.mxu1 %v1068_v1 }
  0xdd   :  { %997 = vmatprep.mubr.msk.f32.mxu1 %vm1069_vm0, %v1068_v1 }
 0x1af   :  { %v163_v10 = vpop.f32.mrb[0].mxu1 }
 0x1b0   :  { %v989_v11 = vpop.f32.mrb[1].mxu1  ;;  %991 = vmatpush3.msra.mxu0 %v163_v10 }
 0x1b1   :  { %993 = vmatmul.mubr.msk.f32.vlgmr.msra.gmra.mrb[2].mxu0 %vm18_vm3, %v936_v9  ;;  %1000 = vmatprep.subr.mxu0 %v1068_v1 }
 0x1b2   :  { %1002 = vmatprep.mubr.msk.f32.mxu0 %vm1069_vm0, %v1068_v1 }
 0x284   :  { %v238_v13 = vpop.f32.mrb[2].mxu0 }
 0x285   :  { %v994_v14 = vpop.f32.mrb[3].mxu0  ;;  %996 = vmatpush3.msra.mxu1 %v238_v13 }
 0x286   :  { %998 = vmatmul.mubr.msk.f32.vlgmr.msra.gmra.mrb[2].mxu1 %vm18_vm3, %v938_v12  ;;  %1005 = vmatprep.subr.mxu1 %v1068_v1 }
 0x287   :  { %1007 = vmatprep.mubr.msk.f32.mxu1 %vm1069_vm0, %v1068_v1 }
 0x359   :  { %v313_v16 = vpop.f32.mrb[2].mxu1 }
 0x35a   :  { %v999_v17 = vpop.f32.mrb[3].mxu1  ;;  %1001 = vmatpush3.msra.mxu0 %v313_v16 }
 0x35b   :  { %1003 = vmatmul.mubr.msk.f32.vlgmr.msra.gmra.mrb[4].mxu0 %vm18_vm3, %v940_v15  ;;  %1010 = vmatprep.subr.mxu0 %v1068_v1 }
 0x35c   :  { %1012 = vmatprep.mubr.msk.f32.mxu0 %vm1069_vm0, %v1068_v1 }
 0x42e   :  { %v388_v19 = vpop.f32.mrb[4].mxu0 }
 0x42f   :  { %v1004_v20 = vpop.f32.mrb[5].mxu0  ;;  %1006 = vmatpush3.msra.mxu1 %v388_v19 }
 0x430   :  { %1008 = vmatmul.mubr.msk.f32.vlgmr.msra.gmra.mrb[4].mxu1 %vm18_vm3, %v942_v18  ;;  %1015 = vmatprep.subr.mxu1 %v1068_v1 }
 0x431   :  { %1017 = vmatprep.mubr.msk.f32.mxu1 %vm1069_vm0, %v1068_v1 }
 0x503   :  { %v463_v22 = vpop.f32.mrb[4].mxu1 }
 0x504   :  { %v1009_v23 = vpop.f32.mrb[5].mxu1  ;;  %1011 = vmatpush3.msra.mxu0 %v463_v22 }
 0x505   :  { %1013 = vmatmul.mubr.msk.f32.vlgmr.msra.gmra.mrb[6].mxu0 %vm18_vm3, %v944_v21  ;;  %1020 = vmatprep.subr.mxu0 %v1068_v1 }
 0x506   :  { %1022 = vmatprep.mubr.msk.f32.mxu0 %vm1069_vm0, %v1068_v1 }
 0x5d8   :  { %v538_v25 = vpop.f32.mrb[6].mxu0 }
 0x5d9   :  { %v1014_v26 = vpop.f32.mrb[7].mxu0  ;;  %1016 = vmatpush3.msra.mxu1 %v538_v25 }
 0x5da   :  { %1018 = vmatmul.mubr.msk.f32.vlgmr.msra.gmra.mrb[6].mxu1 %vm18_vm3, %v946_v24  ;;  %1025 = vmatprep.subr.mxu1 %v1068_v1 }
 0x5db   :  { %1027 = vmatprep.mubr.msk.f32.mxu1 %vm1069_vm0, %v1068_v1 }
 0x6ad   :  { %v613_v28 = vpop.f32.mrb[6].mxu1 }
 0x6ae   :  { %v1019_v29 = vpop.f32.mrb[7].mxu1  ;;  %1021 = vmatpush3.msra.mxu0 %v613_v28 }
 0x6af   :  { %1023 = vmatmul.mubr.msk.f32.vlgmr.msra.gmra.mrb[8].mxu0 %vm18_vm3, %v948_v27  ;;  %1030 = vmatprep.subr.mxu0 %v1068_v1 }
 0x6b0   :  { %1032 = vmatprep.mubr.msk.f32.mxu0 %vm1069_vm0, %v1068_v1 }
 0x782   :  { %v688_v31 = vpop.f32.mrb[8].mxu0 }
 0x783   :  { %v1024_v32 = vpop.f32.mrb[9].mxu0  ;;  %1026 = vmatpush3.msra.mxu1 %v688_v31 }
 0x784   :  { %1028 = vmatmul.mubr.msk.f32.vlgmr.msra.gmra.mrb[8].mxu1 %vm18_vm3, %v950_v30  ;;  %1035 = vmatprep.subr.mxu1 %v1068_v1 }
 0x785   :  { %1037 = vmatprep.mubr.msk.f32.mxu1 %vm1069_vm0, %v1068_v1 }
 0x857   :  { %v763_v34 = vpop.f32.mrb[8].mxu1 }
 0x858   :  { %v1029_v35 = vpop.f32.mrb[9].mxu1  ;;  %1031 = vmatpush3.msra.mxu0 %v763_v34 }
 0x859   :  { %1033 = vmatmul.mubr.msk.f32.vlgmr.msra.gmra.mrb[10].mxu0 %vm18_vm3, %v952_v33 }
 0x92c   :  { %v838_v37 = vpop.f32.mrb[10].mxu0 }
 0x92d   :  { %v1034_v38 = vpop.f32.mrb[11].mxu0  ;;  %1036 = vmatpush3.msra.mxu1 %v838_v37 }
 0x92e   :  { %1038 = vmatmul.mubr.msk.f32.vlgmr.msra.gmra.mrb[10].mxu1 %vm18_vm3, %v954_v36 }
 0xa01   :  { %v913_v39 = vpop.f32.mrb[10].mxu1 }
 0xa02   :  { %917 = vst [vmem:[#allocation2] sm:$0xff] %v913_v39  ;;  %v1039_v40 = vpop.f32.mrb[11].mxu1 }
 0xa03   :  { %1055 = shalt.err (!%p1052_p4)
}
 0xa04   :  { %s1056_s5 = scalar_lea.hbm %s1179_s1, 128 }
 0xa05   :  { %p1057_p5 = scmp.ne.s32.totalorder %s1179_s1, %s1056_s5  ;;  %p1060_p6 = scmp.lt.u32.totalorder %s1056_s5, %s1179_s1 }
 0xa07   :  { %p1062_p7 = pnand %p1060_p6, %p1057_p5 }
 0xa09   :  { %1065 = shalt.err (!%p1062_p7)
}
 0xa0a   :  { %927 = dma.vmem_to_hbm [thread:$0]  %s925_s2, 128, %s1179_s1, [#allocation3]  }
 0xa0b   :  { %1066 = dma.done.wait [#allocation3], 128  }
 0xa0c   :  { %1067 = vsyncadd [#allocation3], 4294967168 }
 0xa0d   :  { %931 = vsyncpa [#allocation3], 1 }

</bundles_post_ra>
